<compile_context>
chip_gen: v7x
topology: tpu7x:2x2x1
jax: 0.10.0
libtpu: 0.0.40
codegen_flags: <defaults>
</compile_context>

<pallas_src>
import functools

import jax
import jax.numpy as jnp
from jax.experimental import pallas as pl
from jax.experimental.pallas import tpu as pltpu

_MIB = 1024 * 1024


def _round_up(n, m):
    return ((n + m - 1) // m) * m


def _vmem_capacity_bytes():
    """Per-core VMEM capacity; conservative 64 MiB (v7x-sized) fallback."""
    try:
        return int(pltpu.get_tpu_info().vmem_capacity_bytes)
    except Exception:
        return 64 * _MIB


def _pick_tm(batch, d0_pad, dl_pad, layer_out_pads, param_bytes, vmem_cap):
    """Largest batch tile (multiple of 8, <=1024) that fits the VMEM budget."""
    # Per-row VMEM bytes: double-buffered bf16 input/output tiles + live f32
    # accumulators for every layer + one bf16 re-quantized activation.
    per_row = 2 * (d0_pad * 2) + 2 * (dl_pad * 2)
    per_row += 4 * sum(layer_out_pads) + 2 * max([d0_pad] + list(layer_out_pads))
    budget = vmem_cap - param_bytes - 8 * _MIB        # headroom for compiler scratch
    tm_cap = max(budget // max(per_row, 1), 8)

    rows_needed = _round_up(batch, 8)
    if batch >= 16:
        # Keep the grid >= 2 so both v7x TensorCores get work.
        rows_needed = min(rows_needed, _round_up(pl.cdiv(batch, 2), 8))

    for cand in (1024, 512, 256, 128, 64, 32, 16, 8):
        if cand <= tm_cap and cand <= rows_needed:
            return cand
    return 8


def _mlp_kernel(*refs, n_layers, neg_slope):
    """Fused MLP on one batch tile.

    refs = (x_ref, w_0, b_0, w_1, b_1, ..., w_{L-1}, b_{L-1}, o_ref)
    x/W are bf16 (MXU operands); bias add + LeakyReLU epilogue in f32.
    """
    x_ref = refs[0]
    o_ref = refs[-1]

    act = x_ref[...]                                   # (tm, D0) bf16
    for i in range(n_layers):
        w_ref = refs[1 + 2 * i]
        b_ref = refs[2 + 2 * i]
        acc = jnp.dot(act, w_ref[...], preferred_element_type=jnp.float32)
        acc = acc + b_ref[...]                         # (1, Dout) f32 broadcast
        if i < n_layers - 1:
            # LeakyReLU(neg_slope) in f32 (v5e has no bf16 VPU).
            acc = jnp.where(acc >= 0, acc, jnp.float32(neg_slope) * acc)
            act = acc.astype(jnp.bfloat16)             # re-quantize for next MXU pass
        else:
            act = acc
    o_ref[...] = act.astype(o_ref.dtype)               # bf16 logits writeback


def _mlp_pallas_call(x_pad, weights_pad, biases_pad, *, neg_slope, tm,
                     single_buffer_params, vmem_cap):
    """x_pad: (B, D0_pad) bf16; W_i: (din_p, dout_p) bf16; b_i: (1, dout_p) f32."""
    n_layers = len(weights_pad)
    B, D0 = x_pad.shape
    DL = weights_pad[-1].shape[1]
    grid = (pl.cdiv(B, tm),)                           # partial trailing tile is OK

    in_specs = [pl.BlockSpec((tm, D0), lambda i: (i, 0))]
    flat_params = []
    for w, b in zip(weights_pad, biases_pad):
        din_p, dout_p = w.shape
        if single_buffer_params:
            # Constant index_map -> DMA'd once, VMEM-resident; single-buffer
            # to halve the resident-parameter footprint.
            in_specs.append(pl.BlockSpec((din_p, dout_p), lambda i: (0, 0),
                                         pipeline_mode=pl.Buffered(1)))
            in_specs.append(pl.BlockSpec((1, dout_p), lambda i: (0, 0),
                                         pipeline_mode=pl.Buffered(1)))
        else:
            in_specs.append(pl.BlockSpec((din_p, dout_p), lambda i: (0, 0)))
            in_specs.append(pl.BlockSpec((1, dout_p), lambda i: (0, 0)))
        flat_params += [w, b]
    out_specs = pl.BlockSpec((tm, DL), lambda i: (i, 0))

    # Cost estimate for XLA's scheduler.
    flops = 0
    bytes_accessed = x_pad.size * 2 + B * DL * 2
    param_bytes = 0
    for w, b in zip(weights_pad, biases_pad):
        flops += 2 * B * w.shape[0] * w.shape[1]
        param_bytes += w.size * 2 + b.size * 4
    bytes_accessed += param_bytes

    # VMEM footprint: resident params (single or double buffered) +
    # double-buffered bf16 x/out tiles + live f32 accumulators.
    n_buf = 1 if single_buffer_params else 2
    vmem_bytes = n_buf * param_bytes
    vmem_bytes += 2 * (tm * D0 * 2) + 2 * (tm * DL * 2)
    vmem_bytes += tm * sum(w.shape[1] for w in weights_pad) * 4
    vmem_limit = int(min(max(vmem_bytes * 5 // 4, 16 * _MIB),
                         vmem_cap - 4 * _MIB))

    kernel = functools.partial(_mlp_kernel, n_layers=n_layers, neg_slope=neg_slope)
    return pl.pallas_call(
        kernel,
        out_shape=jax.ShapeDtypeStruct((B, DL), jnp.bfloat16),
        grid=grid,
        in_specs=in_specs,
        out_specs=out_specs,
        compiler_params=pltpu.CompilerParams(
            dimension_semantics=("parallel",),   # independent batch tiles -> megacore
            vmem_limit_bytes=vmem_limit,
        ),
        cost_estimate=pl.CostEstimate(
            flops=flops, transcendentals=0, bytes_accessed=bytes_accessed
        ),
    )(x_pad, *flat_params)


@functools.partial(
    jax.jit,
    static_argnames=("neg_slope", "tm", "n_classes", "n_inputs",
                     "single_buffer_params", "vmem_cap"))
def mlp_forward(x, weights_pad, biases_pad, *, neg_slope, tm, n_classes,
                n_inputs, single_buffer_params, vmem_cap):
    D0_pad = weights_pad[0].shape[0]
    # Pad only the feature (lane) dim, fused with the bf16 cast.  Padded lanes
    # stay exactly zero through every layer (zero W rows/cols, zero bias pad).
    x16 = x.astype(jnp.bfloat16)
    if D0_pad != n_inputs:
        x16 = jnp.pad(x16, ((0, 0), (0, D0_pad - n_inputs)))
    out = _mlp_pallas_call(
        x16, weights_pad, biases_pad, neg_slope=neg_slope, tm=tm,
        single_buffer_params=single_buffer_params, vmem_cap=vmem_cap)
    return out[:, :n_classes].astype(jnp.float32)


class MLPPallas:
    """Pallas equivalent of the PyTorch MLP module (forward pass)."""

    def __init__(self, n_inputs, n_hidden, n_classes, neg_slope, key):
        self.neg_slope = float(neg_slope)
        self.n_inputs = int(n_inputs)
        self.n_classes = int(n_classes)
        layer_sizes = [n_inputs] + list(n_hidden) + [n_classes]

        self.params = []        # unpadded f32 (reference)
        weights_pad = []        # 128-padded bf16 (kernel, MXU operands)
        biases_pad = []         # 128-padded f32 (kernel epilogue)
        for i in range(len(layer_sizes) - 1):
            din, dout = layer_sizes[i], layer_sizes[i + 1]
            key, wk, bk = jax.random.split(key, 3)
            # Match PyTorch nn.Linear default init: U(-1/sqrt(in), 1/sqrt(in)).
            bound = 1.0 / float(din) ** 0.5
            w = jax.random.uniform(wk, (din, dout), jnp.float32,
                                   minval=-bound, maxval=bound)
            b = jax.random.uniform(bk, (dout,), jnp.float32,
                                   minval=-bound, maxval=bound)
            self.params.append((w, b))

            din_p, dout_p = _round_up(din, 128), _round_up(dout, 128)
            w_p = jnp.zeros((din_p, dout_p), jnp.float32).at[:din, :dout].set(w)
            b_p = jnp.zeros((1, dout_p), jnp.float32).at[0, :dout].set(b)
            weights_pad.append(w_p.astype(jnp.bfloat16))
            biases_pad.append(b_p)

        self.weights_pad = tuple(weights_pad)
        self.biases_pad = tuple(biases_pad)
        self._d0_pad = weights_pad[0].shape[0]
        self._dl_pad = weights_pad[-1].shape[1]
        self._layer_out_pads = tuple(w.shape[1] for w in weights_pad)
        self._param_bytes = sum(w.size * 2 + b.size * 4
                                for w, b in zip(weights_pad, biases_pad))
        self._single_buffer = None   # resolved lazily on first call

    def __call__(self, x):
        vmem_cap = _vmem_capacity_bytes()
        tm = _pick_tm(x.shape[0], self._d0_pad, self._dl_pad,
                      self._layer_out_pads, self._param_bytes, vmem_cap)
        kwargs = dict(neg_slope=self.neg_slope, tm=tm,
                      n_classes=self.n_classes, n_inputs=self.n_inputs,
                      vmem_cap=vmem_cap)
        if self._single_buffer is None:
            try:
                out = mlp_forward(x, self.weights_pad, self.biases_pad,
                                  single_buffer_params=True, **kwargs)
                self._single_buffer = True
                return out
            except Exception:
                # Fallback if this JAX build rejects pl.Buffered(1) here.
                self._single_buffer = False
        return mlp_forward(x, self.weights_pad, self.biases_pad,
                           single_buffer_params=self._single_buffer, **kwargs)

    def reference(self, x):
        """Pure-JAX reference (emulates bf16 MXU operands + bf16 logit store)."""
        n_layers = len(self.params)
        act = x.astype(jnp.float32)
        for idx, (w, b) in enumerate(self.params):
            a16 = act.astype(jnp.bfloat16).astype(jnp.float32)
            w16 = w.astype(jnp.bfloat16).astype(jnp.float32)
            out = a16 @ w16 + b
            if idx < n_layers - 1:
                out = jnp.where(out >= 0, out, self.neg_slope * out)
            act = out
        # Kernel writes bf16 logits; emulate that final quantization.
        return act.astype(jnp.bfloat16).astype(jnp.float32)


if __name__ == "__main__":
    # Small deterministic example: batch=8 flattened inputs of size 128,
    # two hidden layers [64, 32], 10 classes.
    batch = 8
    n_inputs = 128
    n_hidden = [64, 32]
    n_classes = 10
    neg_slope = 0.02

    key = jax.random.PRNGKey(0)
    key, xkey, pkey = jax.random.split(key, 3)
    x = jax.random.normal(xkey, (batch, n_inputs), jnp.float32)

    mlp = MLPPallas(n_inputs, n_hidden, n_classes, neg_slope, pkey)

    out = mlp(x)
    out = jax.block_until_ready(out)

    ref = mlp.reference(x)
    assert out.shape == (batch, n_classes)
    assert jnp.allclose(out, ref, atol=2e-2, rtol=1e-2), (
        float(jnp.max(jnp.abs(out - ref)))
    )

    print("KERNEL_OK")
</pallas_src>

<mosaic_0001>
module attributes {stable_mosaic.version = 11 : i64} {
  func.func @_mlp_kernel(%arg0: i32, %arg1: memref<8x128xbf16, #tpu.memory_space<vmem>>, %arg2: memref<128x128xbf16, #tpu.memory_space<vmem>>, %arg3: memref<1x128xf32, #tpu.memory_space<vmem>>, %arg4: memref<128x128xbf16, #tpu.memory_space<vmem>>, %arg5: memref<1x128xf32, #tpu.memory_space<vmem>>, %arg6: memref<128x128xbf16, #tpu.memory_space<vmem>>, %arg7: memref<1x128xf32, #tpu.memory_space<vmem>>, %arg8: memref<8x128xbf16, #tpu.memory_space<vmem>>) attributes {dimension_semantics = [#tpu.dimension_semantics<parallel>], iteration_bounds = array<i64: 1>, scalar_prefetch = 0 : i64, scratch_operands = 0 : i64, tpu.core_type = #tpu.core_type<tc>, window_params = [{transform_indices = @transform_0, window_bounds = array<i64: 8, 128>}, {pipeline_mode = #tpu.pipeline_mode<synchronous>, transform_indices = @transform_1, window_bounds = array<i64: 128, 128>}, {pipeline_mode = #tpu.pipeline_mode<synchronous>, transform_indices = @transform_2, window_bounds = array<i64: 1, 128>}, {pipeline_mode = #tpu.pipeline_mode<synchronous>, transform_indices = @transform_3, window_bounds = array<i64: 128, 128>}, {pipeline_mode = #tpu.pipeline_mode<synchronous>, transform_indices = @transform_4, window_bounds = array<i64: 1, 128>}, {pipeline_mode = #tpu.pipeline_mode<synchronous>, transform_indices = @transform_5, window_bounds = array<i64: 128, 128>}, {pipeline_mode = #tpu.pipeline_mode<synchronous>, transform_indices = @transform_6, window_bounds = array<i64: 1, 128>}, {transform_indices = @transform_7, window_bounds = array<i64: 8, 128>}]} {
    %c0 = arith.constant 0 : index
    %c0_0 = arith.constant 0 : index
    %0 = vector.load %arg1[%c0, %c0_0] : memref<8x128xbf16, #tpu.memory_space<vmem>>, vector<8x128xbf16>
    %c0_1 = arith.constant 0 : index
    %c0_2 = arith.constant 0 : index
    %1 = vector.load %arg2[%c0_1, %c0_2] : memref<128x128xbf16, #tpu.memory_space<vmem>>, vector<128x128xbf16>
    %cst = arith.constant dense<0.000000e+00> : vector<8x128xf32>
    %2 = tpu.matmul %0, %1, %cst {dimension_numbers = #tpu.dot_dimension_numbers<[1], [0], [0], [1], [0, 0, 1, 1], [], []>} : vector<8x128xbf16>, vector<128x128xbf16>, vector<8x128xf32> -> vector<8x128xf32>
    %c0_3 = arith.constant 0 : index
    %c0_4 = arith.constant 0 : index
    %3 = vector.load %arg3[%c0_3, %c0_4] : memref<1x128xf32, #tpu.memory_space<vmem>>, vector<1x128xf32>
    %4 = vector.broadcast %3 : vector<1x128xf32> to vector<8x128xf32>
    %5 = arith.addf %2, %4 : vector<8x128xf32>
    %cst_5 = arith.constant 0.000000e+00 : f32
    %6 = vector.broadcast %cst_5 : f32 to vector<8x128xf32>
    %7 = arith.cmpf oge, %5, %6 : vector<8x128xf32>
    %cst_6 = arith.constant 2.000000e-02 : f32
    %8 = vector.broadcast %cst_6 : f32 to vector<8x128xf32>
    %9 = arith.mulf %8, %5 : vector<8x128xf32>
    %10 = arith.select %7, %5, %9 : vector<8x128xi1>, vector<8x128xf32>
    %11 = arith.truncf %10 : vector<8x128xf32> to vector<8x128xbf16>
    %c0_7 = arith.constant 0 : index
    %c0_8 = arith.constant 0 : index
    %12 = vector.load %arg4[%c0_7, %c0_8] : memref<128x128xbf16, #tpu.memory_space<vmem>>, vector<128x128xbf16>
    %cst_9 = arith.constant dense<0.000000e+00> : vector<8x128xf32>
    %13 = tpu.matmul %11, %12, %cst_9 {dimension_numbers = #tpu.dot_dimension_numbers<[1], [0], [0], [1], [0, 0, 1, 1], [], []>} : vector<8x128xbf16>, vector<128x128xbf16>, vector<8x128xf32> -> vector<8x128xf32>
    %c0_10 = arith.constant 0 : index
    %c0_11 = arith.constant 0 : index
    %14 = vector.load %arg5[%c0_10, %c0_11] : memref<1x128xf32, #tpu.memory_space<vmem>>, vector<1x128xf32>
    %15 = vector.broadcast %14 : vector<1x128xf32> to vector<8x128xf32>
    %16 = arith.addf %13, %15 : vector<8x128xf32>
    %cst_12 = arith.constant 0.000000e+00 : f32
    %17 = vector.broadcast %cst_12 : f32 to vector<8x128xf32>
    %18 = arith.cmpf oge, %16, %17 : vector<8x128xf32>
    %cst_13 = arith.constant 2.000000e-02 : f32
    %19 = vector.broadcast %cst_13 : f32 to vector<8x128xf32>
    %20 = arith.mulf %19, %16 : vector<8x128xf32>
    %21 = arith.select %18, %16, %20 : vector<8x128xi1>, vector<8x128xf32>
    %22 = arith.truncf %21 : vector<8x128xf32> to vector<8x128xbf16>
    %c0_14 = arith.constant 0 : index
    %c0_15 = arith.constant 0 : index
    %23 = vector.load %arg6[%c0_14, %c0_15] : memref<128x128xbf16, #tpu.memory_space<vmem>>, vector<128x128xbf16>
    %cst_16 = arith.constant dense<0.000000e+00> : vector<8x128xf32>
    %24 = tpu.matmul %22, %23, %cst_16 {dimension_numbers = #tpu.dot_dimension_numbers<[1], [0], [0], [1], [0, 0, 1, 1], [], []>} : vector<8x128xbf16>, vector<128x128xbf16>, vector<8x128xf32> -> vector<8x128xf32>
    %c0_17 = arith.constant 0 : index
    %c0_18 = arith.constant 0 : index
    %25 = vector.load %arg7[%c0_17, %c0_18] : memref<1x128xf32, #tpu.memory_space<vmem>>, vector<1x128xf32>
    %26 = vector.broadcast %25 : vector<1x128xf32> to vector<8x128xf32>
    %27 = arith.addf %24, %26 : vector<8x128xf32>
    %28 = arith.truncf %27 : vector<8x128xf32> to vector<8x128xbf16>
    %c0_19 = arith.constant 0 : index
    %c0_20 = arith.constant 0 : index
    %29 = vector.load %arg8[%c0_19, %c0_20] : memref<8x128xbf16, #tpu.memory_space<vmem>>, vector<8x128xbf16>
    tpu.vector_store %arg8[%c0_19, %c0_20], %28 {strides = array<i32>} : memref<8x128xbf16, #tpu.memory_space<vmem>>, vector<8x128xbf16>,
    return
  }
  func.func @transform_0(%arg0: i32) -> (i32, i32) {
    %c0_i32 = arith.constant 0 : i32
    %c0_i32_0 = arith.constant 0 : i32
    return %arg0, %c0_i32 : i32, i32
  }
  func.func @transform_1(%arg0: i32) -> (i32, i32) {
    %c0_i32 = arith.constant 0 : i32
    %c0_i32_0 = arith.constant 0 : i32
    %c0_i32_1 = arith.constant 0 : i32
    return %c0_i32, %c0_i32_0 : i32, i32
  }
  func.func @transform_2(%arg0: i32) -> (i32, i32) {
    %c0_i32 = arith.constant 0 : i32
    %c0_i32_0 = arith.constant 0 : i32
    %c0_i32_1 = arith.constant 0 : i32
    return %c0_i32, %c0_i32_0 : i32, i32
  }
  func.func @transform_3(%arg0: i32) -> (i32, i32) {
    %c0_i32 = arith.constant 0 : i32
    %c0_i32_0 = arith.constant 0 : i32
    %c0_i32_1 = arith.constant 0 : i32
    return %c0_i32, %c0_i32_0 : i32, i32
  }
  func.func @transform_4(%arg0: i32) -> (i32, i32) {
    %c0_i32 = arith.constant 0 : i32
    %c0_i32_0 = arith.constant 0 : i32
    %c0_i32_1 = arith.constant 0 : i32
    return %c0_i32, %c0_i32_0 : i32, i32
  }
  func.func @transform_5(%arg0: i32) -> (i32, i32) {
    %c0_i32 = arith.constant 0 : i32
    %c0_i32_0 = arith.constant 0 : i32
    %c0_i32_1 = arith.constant 0 : i32
    return %c0_i32, %c0_i32_0 : i32, i32
  }
  func.func @transform_6(%arg0: i32) -> (i32, i32) {
    %c0_i32 = arith.constant 0 : i32
    %c0_i32_0 = arith.constant 0 : i32
    %c0_i32_1 = arith.constant 0 : i32
    return %c0_i32, %c0_i32_0 : i32, i32
  }
  func.func @transform_7(%arg0: i32) -> (i32, i32) {
    %c0_i32 = arith.constant 0 : i32
    %c0_i32_0 = arith.constant 0 : i32
    return %arg0, %c0_i32 : i32, i32
  }
}

module attributes {stable_mosaic.version = 11 : i64} {
  func.func @_mlp_kernel(%arg0: i32, %arg1: memref<8x128xbf16, #tpu.memory_space<vmem>>, %arg2: memref<128x128xbf16, #tpu.memory_space<vmem>>, %arg3: memref<1x128xf32, #tpu.memory_space<vmem>>, %arg4: memref<128x128xbf16, #tpu.memory_space<vmem>>, %arg5: memref<1x128xf32, #tpu.memory_space<vmem>>, %arg6: memref<128x128xbf16, #tpu.memory_space<vmem>>, %arg7: memref<1x128xf32, #tpu.memory_space<vmem>>, %arg8: memref<8x128xbf16, #tpu.memory_space<vmem>>) attributes {dimension_semantics = [#tpu.dimension_semantics<parallel>], iteration_bounds = array<i64: 1>, scalar_prefetch = 0 : i64, scratch_operands = 0 : i64, tpu.core_type = #tpu.core_type<tc>, window_params = [{transform_indices = @transform_0, window_bounds = array<i64: 8, 128>}, {pipeline_mode = #tpu.pipeline_mode<synchronous>, transform_indices = @transform_1, window_bounds = array<i64: 128, 128>}, {pipeline_mode = #tpu.pipeline_mode<synchronous>, transform_indices = @transform_2, window_bounds = array<i64: 1, 128>}, {pipeline_mode = #tpu.pipeline_mode<synchronous>, transform_indices = @transform_3, window_bounds = array<i64: 128, 128>}, {pipeline_mode = #tpu.pipeline_mode<synchronous>, transform_indices = @transform_4, window_bounds = array<i64: 1, 128>}, {pipeline_mode = #tpu.pipeline_mode<synchronous>, transform_indices = @transform_5, window_bounds = array<i64: 128, 128>}, {pipeline_mode = #tpu.pipeline_mode<synchronous>, transform_indices = @transform_6, window_bounds = array<i64: 1, 128>}, {transform_indices = @transform_7, window_bounds = array<i64: 8, 128>}]} {
    %c0 = arith.constant 0 : index
    %c0_0 = arith.constant 0 : index
    %0 = vector.load %arg1[%c0, %c0_0] : memref<8x128xbf16, #tpu.memory_space<vmem>>, vector<8x128xbf16>
    %c0_1 = arith.constant 0 : index
    %c0_2 = arith.constant 0 : index
    %1 = vector.load %arg2[%c0_1, %c0_2] : memref<128x128xbf16, #tpu.memory_space<vmem>>, vector<128x128xbf16>
    %cst = arith.constant dense<0.000000e+00> : vector<8x128xf32>
    %2 = tpu.matmul %0, %1, %cst {dimension_numbers = #tpu.dot_dimension_numbers<[1], [0], [0], [1], [0, 0, 1, 1], [], []>} : vector<8x128xbf16>, vector<128x128xbf16>, vector<8x128xf32> -> vector<8x128xf32>
    %c0_3 = arith.constant 0 : index
    %c0_4 = arith.constant 0 : index
    %3 = vector.load %arg3[%c0_3, %c0_4] : memref<1x128xf32, #tpu.memory_space<vmem>>, vector<1x128xf32>
    %4 = vector.broadcast %3 : vector<1x128xf32> to vector<8x128xf32>
    %5 = arith.addf %2, %4 : vector<8x128xf32>
    %cst_5 = arith.constant 0.000000e+00 : f32
    %6 = vector.broadcast %cst_5 : f32 to vector<8x128xf32>
    %7 = arith.cmpf oge, %5, %6 : vector<8x128xf32>
    %cst_6 = arith.constant 2.000000e-02 : f32
    %8 = vector.broadcast %cst_6 : f32 to vector<8x128xf32>
    %9 = arith.mulf %8, %5 : vector<8x128xf32>
    %10 = arith.select %7, %5, %9 : vector<8x128xi1>, vector<8x128xf32>
    %11 = arith.truncf %10 : vector<8x128xf32> to vector<8x128xbf16>
    %c0_7 = arith.constant 0 : index
    %c0_8 = arith.constant 0 : index
    %12 = vector.load %arg4[%c0_7, %c0_8] : memref<128x128xbf16, #tpu.memory_space<vmem>>, vector<128x128xbf16>
    %cst_9 = arith.constant dense<0.000000e+00> : vector<8x128xf32>
    %13 = tpu.matmul %11, %12, %cst_9 {dimension_numbers = #tpu.dot_dimension_numbers<[1], [0], [0], [1], [0, 0, 1, 1], [], []>} : vector<8x128xbf16>, vector<128x128xbf16>, vector<8x128xf32> -> vector<8x128xf32>
    %c0_10 = arith.constant 0 : index
    %c0_11 = arith.constant 0 : index
    %14 = vector.load %arg5[%c0_10, %c0_11] : memref<1x128xf32, #tpu.memory_space<vmem>>, vector<1x128xf32>
    %15 = vector.broadcast %14 : vector<1x128xf32> to vector<8x128xf32>
    %16 = arith.addf %13, %15 : vector<8x128xf32>
    %cst_12 = arith.constant 0.000000e+00 : f32
    %17 = vector.broadcast %cst_12 : f32 to vector<8x128xf32>
    %18 = arith.cmpf oge, %16, %17 : vector<8x128xf32>
    %cst_13 = arith.constant 2.000000e-02 : f32
    %19 = vector.broadcast %cst_13 : f32 to vector<8x128xf32>
    %20 = arith.mulf %19, %16 : vector<8x128xf32>
    %21 = arith.select %18, %16, %20 : vector<8x128xi1>, vector<8x128xf32>
    %22 = arith.truncf %21 : vector<8x128xf32> to vector<8x128xbf16>
    %c0_14 = arith.constant 0 : index
    %c0_15 = arith.constant 0 : index
    %23 = vector.load %arg6[%c0_14, %c0_15] : memref<128x128xbf16, #tpu.memory_space<vmem>>, vector<128x128xbf16>
    %cst_16 = arith.constant dense<0.000000e+00> : vector<8x128xf32>
    %24 = tpu.matmul %22, %23, %cst_16 {dimension_numbers = #tpu.dot_dimension_numbers<[1], [0], [0], [1], [0, 0, 1, 1], [], []>} : vector<8x128xbf16>, vector<128x128xbf16>, vector<8x128xf32> -> vector<8x128xf32>
    %c0_17 = arith.constant 0 : index
    %c0_18 = arith.constant 0 : index
    %25 = vector.load %arg7[%c0_17, %c0_18] : memref<1x128xf32, #tpu.memory_space<vmem>>, vector<1x128xf32>
    %26 = vector.broadcast %25 : vector<1x128xf32> to vector<8x128xf32>
    %27 = arith.addf %24, %26 : vector<8x128xf32>
    %28 = arith.truncf %27 : vector<8x128xf32> to vector<8x128xbf16>
    %c0_19 = arith.constant 0 : index
    %c0_20 = arith.constant 0 : index
    %29 = vector.load %arg8[%c0_19, %c0_20] : memref<8x128xbf16, #tpu.memory_space<vmem>>, vector<8x128xbf16>
    tpu.vector_store %arg8[%c0_19, %c0_20], %28 {strides = array<i32>} : memref<8x128xbf16, #tpu.memory_space<vmem>>, vector<8x128xbf16>,
    return
  }
  func.func @transform_0(%arg0: i32) -> (i32, i32) {
    %c0_i32 = arith.constant 0 : i32
    %c0_i32_0 = arith.constant 0 : i32
    return %arg0, %c0_i32 : i32, i32
  }
  func.func @transform_1(%arg0: i32) -> (i32, i32) {
    %c0_i32 = arith.constant 0 : i32
    %c0_i32_0 = arith.constant 0 : i32
    %c0_i32_1 = arith.constant 0 : i32
    return %c0_i32, %c0_i32_0 : i32, i32
  }
  func.func @transform_2(%arg0: i32) -> (i32, i32) {
    %c0_i32 = arith.constant 0 : i32
    %c0_i32_0 = arith.constant 0 : i32
    %c0_i32_1 = arith.constant 0 : i32
    return %c0_i32, %c0_i32_0 : i32, i32
  }
  func.func @transform_3(%arg0: i32) -> (i32, i32) {
    %c0_i32 = arith.constant 0 : i32
    %c0_i32_0 = arith.constant 0 : i32
    %c0_i32_1 = arith.constant 0 : i32
    return %c0_i32, %c0_i32_0 : i32, i32
  }
  func.func @transform_4(%arg0: i32) -> (i32, i32) {
    %c0_i32 = arith.constant 0 : i32
    %c0_i32_0 = arith.constant 0 : i32
    %c0_i32_1 = arith.constant 0 : i32
    return %c0_i32, %c0_i32_0 : i32, i32
  }
  func.func @transform_5(%arg0: i32) -> (i32, i32) {
    %c0_i32 = arith.constant 0 : i32
    %c0_i32_0 = arith.constant 0 : i32
    %c0_i32_1 = arith.constant 0 : i32
    return %c0_i32, %c0_i32_0 : i32, i32
  }
  func.func @transform_6(%arg0: i32) -> (i32, i32) {
    %c0_i32 = arith.constant 0 : i32
    %c0_i32_0 = arith.constant 0 : i32
    %c0_i32_1 = arith.constant 0 : i32
    return %c0_i32, %c0_i32_0 : i32, i32
  }
  func.func @transform_7(%arg0: i32) -> (i32, i32) {
    %c0_i32 = arith.constant 0 : i32
    %c0_i32_0 = arith.constant 0 : i32
    return %arg0, %c0_i32 : i32, i32
  }
}

</mosaic_0001>

<bundles_post_ra>
// kernel: mlp_forward.1
= control target key start
LH: loop header
LB: loop body
LE: loop exit
PB: predicated region body
PF: predicated region fallthrough
CT: control target
= control target key end

     0   :  { %12 = vsyncpa [#allocation3], 0  ;;  %s777_s0 = inlined_call_operand.vmem [shape: bf16[8,128], index: 0, kind: input, shape index: {}]   ;;  %s778_s1 = inlined_call_operand.hbm [shape: bf16[128,128], index: 1, kind: input, shape index: {}]   ;;  %s779_s2 = inlined_call_operand.vmem [shape: f32[1,128], index: 2, kind: input, shape index: {}]   ;;  %s780_s3 = inlined_call_operand.hbm [shape: bf16[128,128], index: 3, kind: input, shape index: {}]   ;;  %s781_s4 = inlined_call_operand.vmem [shape: f32[1,128], index: 4, kind: input, shape index: {}]   ;;  %s782_s5 = inlined_call_operand.hbm [shape: bf16[128,128], index: 5, kind: input, shape index: {}]   ;;  %s783_s6 = inlined_call_operand.vmem [shape: f32[1,128], index: 6, kind: input, shape index: {}]   ;;  %s784_s7 = inlined_call_operand.vmem [shape: bf16[8,128], index: 7, kind: output, shape index: {}]  }
   0x1   :  { %13 = vsyncpa [#allocation5], 0  ;;  %s633_s24 = smov [#allocation4]   ;;  %s634_s26 = smov [#allocation2]  }
   0x2   :  { %s35_s25 = sshll.u32 %s633_s24, 4  ;;  %s21_s27 = sshll.u32 %s634_s26, 4  ;;  %s36_s25 = int_to_ptr.vmem [resolvable:$true] %s35_s25  ;;  %s680_s27 = int_to_ptr.vmem [resolvable:$true] %s21_s27 }
   0x3   :  { %s563_s30 = scalar_lea.hbm %s780_s3, 1024 }
   0x4   :  { %p564_p0 = scmp.ne.s32.totalorder %s780_s3, %s563_s30  ;;  %p567_p1 = scmp.lt.u32.totalorder %s563_s30, %s780_s3 }
   0x6   :  { %p569_p2 = pnand %p567_p1, %p564_p0 }
   0x8   :  { %572 = shalt.err (!%p569_p2)
}
   0x9   :  { %s573_s12 = scalar_lea.vmem %s36_s25, 1024  ;;  %p578_p4 = scmp.lt.s32.totalorder %s36_s25, %s36_s25 }
   0xa   :  { %p574_p3 = scmp.ne.s32.totalorder %s36_s25, %s573_s12  ;;  %p579_p5 = scmp.lt.s32.totalorder %s573_s12, %s573_s12 }
   0xc   :  { %p580_p6 = por %p579_p5, %p578_p4 }
   0xe   :  { %p581_p7 = pnand %p580_p6, %p574_p3 }
  0x10   :  { %584 = shalt.err (!%p581_p7)
}
  0x11   :  { %s635_s13 = smov 64   ;;  %s636_s14 = smov 4  }
  0x12   :  { %41 = dma.hbm_to_vmem [thread:$0]  %s780_s3, 1024, %s36_s25, [#allocation5], %s635_s13, %s635_s13, %s636_s14  }
  0x13   :  { %s585_s19 = scalar_lea.hbm %s778_s1, 1024 }
  0x14   :  { %p586_p8 = scmp.ne.s32.totalorder %s778_s1, %s585_s19  ;;  %p589_p9 = scmp.lt.u32.totalorder %s585_s19, %s778_s1 }
  0x16   :  { %p591_p10 = pnand %p589_p9, %p586_p8 }
  0x18   :  { %594 = shalt.err (!%p591_p10)
}
  0x19   :  { %s595_s24 = scalar_lea.vmem %s680_s27, 1024  ;;  %p600_p12 = scmp.lt.s32.totalorder %s680_s27, %s680_s27 }
  0x1a   :  { %p596_p11 = scmp.ne.s32.totalorder %s680_s27, %s595_s24  ;;  %p601_p13 = scmp.lt.s32.totalorder %s595_s24, %s595_s24 }
  0x1c   :  { %p602_p0 = por %p601_p13, %p600_p12 }
  0x1e   :  { %p603_p1 = pnand %p602_p0, %p596_p11 }
  0x20   :  { %606 = shalt.err (!%p603_p1)
}
  0x21   :  { %27 = dma.hbm_to_vmem [thread:$0]  %s778_s1, 1024, %s680_s27, [#allocation3], %s635_s13, %s635_s13, %s636_s14  }
  0x22   :  { %s637_s26 = smov [#allocation6]   ;;  %s607_s8 = scalar_lea.hbm %s782_s5, 1024 }
  0x23   :  { %s49_s28 = sshll.u32 %s637_s26, 4  ;;  %p608_p2 = scmp.ne.s32.totalorder %s782_s5, %s607_s8  ;;  %s50_s28 = int_to_ptr.vmem [resolvable:$true] %s49_s28 }
  0x24   :  { %p611_p3 = scmp.lt.u32.totalorder %s607_s8, %s782_s5 }
  0x26   :  { %p613_p4 = pnand %p611_p3, %p608_p2 }
  0x28   :  { %616 = shalt.err (!%p613_p4)
}
  0x29   :  { %s617_s15 = scalar_lea.vmem %s50_s28, 1024  ;;  %p622_p6 = scmp.lt.s32.totalorder %s50_s28, %s50_s28 }
  0x2a   :  { %p618_p5 = scmp.ne.s32.totalorder %s50_s28, %s617_s15  ;;  %p623_p7 = scmp.lt.s32.totalorder %s617_s15, %s617_s15 }
  0x2c   :  { %p624_p8 = por %p623_p7, %p622_p6 }
  0x2e   :  { %p625_p9 = pnand %p624_p8, %p618_p5 }
  0x30   :  { %628 = shalt.err (!%p625_p9)
}
  0x31   :  { %55 = dma.hbm_to_vmem [thread:$0]  %s782_s5, 1024, %s50_s28, [#allocation5], %s635_s13, %s635_s13, %s636_s14  }
  0x32   :  { %629 = dma.done.wait [#allocation3], 1024  }
  0x33   :  { %630 = vsyncadd [#allocation3], 4294966272 }
  0x34   :  { %631 = dma.done.wait [#allocation5], 2048  }
  0x35   :  { %632 = vsyncadd [#allocation5], 4294965248  ;;  %v638_v0 = vmov 0.0   ;;  %vm639_vm0 = vmmov 0   ;;  %v539_v1 = vld [vmem:[#allocation2] sm:$0xff]   ;;  %v540_v2 = vld [vmem:[#allocation2 + $0x8] sm:$0xff]  }
  0x36   :  { %472 = vmatprep.subr.bf16.mxu0 %v638_v0  ;;  %488 = vmatprep.mubr.msk.bf16.mxu0 %vm639_vm0, %v638_v0  ;;  %v541_v3 = vld [vmem:[#allocation2 + $0x10] sm:$0xff]   ;;  %v547_v4 = vld [vmem:[#allocation4] sm:$0xff]   ;;  %v542_v5 = vld [vmem:[#allocation2 + $0x18] sm:$0xff]  }
  0x37   :  { %492 = vmatprep.subr.bf16.mxu1 %v638_v0  ;;  %508 = vmatprep.mubr.msk.bf16.mxu1 %vm639_vm0, %v638_v0  ;;  %v548_v6 = vld [vmem:[#allocation4 + $0x8] sm:$0xff]   ;;  %v543_v7 = vld [vmem:[#allocation2 + $0x20] sm:$0xff]   ;;  %v549_v8 = vld [vmem:[#allocation4 + $0x10] sm:$0xff]  }
  0x38   :  { %473 = vmatpush3.bf16.msra.mxu0 %v539_v1  ;;  %493 = vmatpush3.bf16.msra.mxu1 %v547_v4  ;;  %v544_v9 = vld [vmem:[#allocation2 + $0x28] sm:$0xff]   ;;  %v550_v10 = vld [vmem:[#allocation4 + $0x18] sm:$0xff]   ;;  %v545_v11 = vld [vmem:[#allocation2 + $0x30] sm:$0xff]  }
  0x39   :  { %474 = vmatprep.subr.bf16.mxu0 %v638_v0  ;;  %494 = vmatprep.subr.bf16.mxu1 %v638_v0  ;;  %v551_v12 = vld [vmem:[#allocation4 + $0x20] sm:$0xff]   ;;  %v546_v13 = vld [vmem:[#allocation2 + $0x38] sm:$0xff]   ;;  %v552_v14 = vld [vmem:[#allocation4 + $0x28] sm:$0xff]  }
  0x3a   :  { %v68_v15 = vld [vmem:[%s777_s0] sm:$0xf]  ;;  %v553_v16 = vld [vmem:[#allocation4 + $0x30] sm:$0xff]   ;;  %v554_v17 = vld [vmem:[#allocation4 + $0x38] sm:$0xff]  }
  0x3b   :  { %v555_v18 = vld [vmem:[#allocation6] sm:$0xff]   ;;  %v556_v19 = vld [vmem:[#allocation6 + $0x8] sm:$0xff]   ;;  %v557_v20 = vld [vmem:[#allocation6 + $0x10] sm:$0xff]  }
  0x3c   :  { %475 = vmatpush3.bf16.msra.mxu0 %v540_v2  ;;  %495 = vmatpush3.bf16.msra.mxu1 %v548_v6  ;;  %v558_v21 = vld [vmem:[#allocation6 + $0x18] sm:$0xff]   ;;  %v559_v22 = vld [vmem:[#allocation6 + $0x20] sm:$0xff]   ;;  %v560_v23 = vld [vmem:[#allocation6 + $0x28] sm:$0xff]  }
  0x3d   :  { %476 = vmatprep.subr.bf16.mxu0 %v638_v0  ;;  %496 = vmatprep.subr.bf16.mxu1 %v638_v0  ;;  %v418_v24 = vld [vmem:[%s779_s2] ss:$0 sm:$0xff]  ;;  %v561_v33 = vld [vmem:[#allocation6 + $0x30] sm:$0xff]   ;;  %v562_v34 = vld [vmem:[#allocation6 + $0x38] sm:$0xff]  }
  0x3e   :  { %v427_v35 = vld [vmem:[%s781_s4] ss:$0 sm:$0xff] }
  0x3f   :  { %v436_v44 = vld [vmem:[%s783_s6] ss:$0 sm:$0xff] }
  0x40   :  { %477 = vmatpush3.bf16.msra.mxu0 %v541_v3  ;;  %497 = vmatpush3.bf16.msra.mxu1 %v549_v8 }
  0x41   :  { %478 = vmatprep.subr.bf16.mxu0 %v638_v0  ;;  %498 = vmatprep.subr.bf16.mxu1 %v638_v0 }
  0x44   :  { %479 = vmatpush3.bf16.msra.mxu0 %v542_v5  ;;  %499 = vmatpush3.bf16.msra.mxu1 %v550_v10 }
  0x45   :  { %480 = vmatprep.subr.bf16.mxu0 %v638_v0  ;;  %500 = vmatprep.subr.bf16.mxu1 %v638_v0 }
  0x48   :  { %481 = vmatpush3.bf16.msra.mxu0 %v543_v7  ;;  %501 = vmatpush3.bf16.msra.mxu1 %v551_v12 }
  0x49   :  { %482 = vmatprep.subr.bf16.mxu0 %v638_v0  ;;  %502 = vmatprep.subr.bf16.mxu1 %v638_v0 }
  0x4c   :  { %483 = vmatpush3.bf16.msra.mxu0 %v544_v9  ;;  %503 = vmatpush3.bf16.msra.mxu1 %v552_v14 }
  0x4d   :  { %484 = vmatprep.subr.bf16.mxu0 %v638_v0  ;;  %504 = vmatprep.subr.bf16.mxu1 %v638_v0 }
  0x50   :  { %485 = vmatpush3.bf16.msra.mxu0 %v545_v11  ;;  %505 = vmatpush3.bf16.msra.mxu1 %v553_v16 }
  0x51   :  { %486 = vmatprep.subr.bf16.mxu0 %v638_v0  ;;  %506 = vmatprep.subr.bf16.mxu1 %v638_v0 }
  0x54   :  { %487 = vmatpush3.bf16.msra.mxu0 %v546_v13  ;;  %507 = vmatpush3.bf16.msra.mxu1 %v554_v17 }
  0x55   :  { %512 = vmatprep.subr.bf16.mxu0 %v638_v0 }
  0x57   :  { %489 = vmatmul.mubr.bf16.vlgmr.msra.gmra.mrb[0].mxu0 %v68_v15 }
  0x58   :  { %528 = vmatprep.mubr.msk.bf16.mxu0 %vm639_vm0, %v638_v0  ;;  %513 = vmatpush3.bf16.msra.mxu0 %v555_v18 }
  0x59   :  { %514 = vmatprep.subr.bf16.mxu0 %v638_v0 }
  0x5c   :  { %515 = vmatpush3.bf16.msra.mxu0 %v556_v19 }
  0x5d   :  { %516 = vmatprep.subr.bf16.mxu0 %v638_v0 }
  0x60   :  { %517 = vmatpush3.bf16.msra.mxu0 %v557_v20 }
  0x61   :  { %518 = vmatprep.subr.bf16.mxu0 %v638_v0 }
  0x64   :  { %519 = vmatpush3.bf16.msra.mxu0 %v558_v21 }
  0x65   :  { %520 = vmatprep.subr.bf16.mxu0 %v638_v0 }
  0x68   :  { %521 = vmatpush3.bf16.msra.mxu0 %v559_v22 }
  0x69   :  { %522 = vmatprep.subr.bf16.mxu0 %v638_v0 }
  0x6c   :  { %523 = vmatpush3.bf16.msra.mxu0 %v560_v23 }
  0x6d   :  { %524 = vmatprep.subr.bf16.mxu0 %v638_v0 }
  0x70   :  { %525 = vmatpush3.bf16.msra.mxu0 %v561_v33 }
  0x71   :  { %526 = vmatprep.subr.bf16.mxu0 %v638_v0 }
  0x74   :  { %527 = vmatpush3.bf16.msra.mxu0 %v562_v34 }
 0x12a   :  { %v174_v25 = vpop.f32.mrb[0].mxu0 }
 0x12b   :  { %v175_v26 = vadd.f32 %v418_v24, %v174_v25  ;;  %v490_v27 = vpop.f32.mrb[1].mxu0 }
 0x12c   :  { %v177_v28 = vpop.f32.mrb[2].mxu0 }
 0x12d   :  { %vm180_vm1 = vcmp.ge.f32.partialorder %v175_v26, 0.0  ;;  %v181_v29 = vmul.f32 0.02, %v175_v26  ;;  %v491_v30 = vpop.f32.mrb[3].mxu0 }
 0x12f   :  { %v182_v31 = vsel %vm180_vm1, %v175_v26, %v181_v29 }
 0x130   :  { %v183_v32 = vpack.c.bf16 %v182_v31, %v182_v31 }
 0x132   :  { %509 = vmatmul.mubr.bf16.vlgmr.msra.gmra.mrb[0].mxu1 %v183_v32 }
 0x205   :  { %v289_v36 = vpop.f32.mrb[0].mxu1 }
 0x206   :  { %v290_v37 = vadd.f32 %v427_v35, %v289_v36  ;;  %v510_v38 = vpop.f32.mrb[1].mxu1 }
 0x207   :  { %v292_v39 = vpop.f32.mrb[2].mxu1 }
 0x208   :  { %vm295_vm2 = vcmp.ge.f32.partialorder %v290_v37, 0.0  ;;  %v296_v40 = vmul.f32 0.02, %v290_v37  ;;  %v511_v41 = vpop.f32.mrb[3].mxu1 }
 0x20a   :  { %v297_v42 = vsel %vm295_vm2, %v290_v37, %v296_v40 }
 0x20b   :  { %v298_v43 = vpack.c.bf16 %v297_v42, %v297_v42 }
 0x20d   :  { %529 = vmatmul.mubr.bf16.vlgmr.msra.gmra.mrb[4].mxu0 %v298_v43 }
 0x2e0   :  { %v404_v45 = vpop.f32.mrb[4].mxu0 }
 0x2e1   :  { %v405_v46 = vadd.f32 %v436_v44, %v404_v45  ;;  %v530_v47 = vpop.f32.mrb[5].mxu0 }
 0x2e2   :  { %v407_v48 = vpop.f32.mrb[6].mxu0 }
 0x2e3   :  { %v410_v49 = vpack.c.bf16 %v405_v46, %v405_v46  ;;  %v531_v50 = vpop.f32.mrb[7].mxu0 }
 0x2e5   :  { %411 = vst [vmem:[%s784_s7] sm:$0xf] %v410_v49 }
 0x2e6   :  { %416 = vsyncpa [#allocation3], 1 }
 0x2e7   :  { %417 = vsyncpa [#allocation5], 1 }

// kernel: mlp_forward.1
= control target key start
LH: loop header
LB: loop body
LE: loop exit
PB: predicated region body
PF: predicated region fallthrough
CT: control target
= control target key end

     0   :  { %12 = vsyncpa [#allocation3], 0  ;;  %s777_s0 = inlined_call_operand.vmem [shape: bf16[8,128], index: 0, kind: input, shape index: {}]   ;;  %s778_s1 = inlined_call_operand.hbm [shape: bf16[128,128], index: 1, kind: input, shape index: {}]   ;;  %s779_s2 = inlined_call_operand.vmem [shape: f32[1,128], index: 2, kind: input, shape index: {}]   ;;  %s780_s3 = inlined_call_operand.hbm [shape: bf16[128,128], index: 3, kind: input, shape index: {}]   ;;  %s781_s4 = inlined_call_operand.vmem [shape: f32[1,128], index: 4, kind: input, shape index: {}]   ;;  %s782_s5 = inlined_call_operand.hbm [shape: bf16[128,128], index: 5, kind: input, shape index: {}]   ;;  %s783_s6 = inlined_call_operand.vmem [shape: f32[1,128], index: 6, kind: input, shape index: {}]   ;;  %s784_s7 = inlined_call_operand.vmem [shape: bf16[8,128], index: 7, kind: output, shape index: {}]  }
   0x1   :  { %13 = vsyncpa [#allocation5], 0  ;;  %s633_s24 = smov [#allocation4]   ;;  %s634_s26 = smov [#allocation2]  }
   0x2   :  { %s35_s25 = sshll.u32 %s633_s24, 4  ;;  %s21_s27 = sshll.u32 %s634_s26, 4  ;;  %s36_s25 = int_to_ptr.vmem [resolvable:$true] %s35_s25  ;;  %s680_s27 = int_to_ptr.vmem [resolvable:$true] %s21_s27 }
   0x3   :  { %s563_s30 = scalar_lea.hbm %s780_s3, 1024 }
   0x4   :  { %p564_p0 = scmp.ne.s32.totalorder %s780_s3, %s563_s30  ;;  %p567_p1 = scmp.lt.u32.totalorder %s563_s30, %s780_s3 }
   0x6   :  { %p569_p2 = pnand %p567_p1, %p564_p0 }
   0x8   :  { %572 = shalt.err (!%p569_p2)
}
   0x9   :  { %s573_s12 = scalar_lea.vmem %s36_s25, 1024  ;;  %p578_p4 = scmp.lt.s32.totalorder %s36_s25, %s36_s25 }
   0xa   :  { %p574_p3 = scmp.ne.s32.totalorder %s36_s25, %s573_s12  ;;  %p579_p5 = scmp.lt.s32.totalorder %s573_s12, %s573_s12 }
   0xc   :  { %p580_p6 = por %p579_p5, %p578_p4 }
   0xe   :  { %p581_p7 = pnand %p580_p6, %p574_p3 }
  0x10   :  { %584 = shalt.err (!%p581_p7)
}
  0x11   :  { %s635_s13 = smov 64   ;;  %s636_s14 = smov 4  }
  0x12   :  { %41 = dma.hbm_to_vmem [thread:$0]  %s780_s3, 1024, %s36_s25, [#allocation5], %s635_s13, %s635_s13, %s636_s14  }
  0x13   :  { %s585_s19 = scalar_lea.hbm %s778_s1, 1024 }
  0x14   :  { %p586_p8 = scmp.ne.s32.totalorder %s778_s1, %s585_s19  ;;  %p589_p9 = scmp.lt.u32.totalorder %s585_s19, %s778_s1 }
  0x16   :  { %p591_p10 = pnand %p589_p9, %p586_p8 }
  0x18   :  { %594 = shalt.err (!%p591_p10)
}
  0x19   :  { %s595_s24 = scalar_lea.vmem %s680_s27, 1024  ;;  %p600_p12 = scmp.lt.s32.totalorder %s680_s27, %s680_s27 }
  0x1a   :  { %p596_p11 = scmp.ne.s32.totalorder %s680_s27, %s595_s24  ;;  %p601_p13 = scmp.lt.s32.totalorder %s595_s24, %s595_s24 }
  0x1c   :  { %p602_p0 = por %p601_p13, %p600_p12 }
  0x1e   :  { %p603_p1 = pnand %p602_p0, %p596_p11 }
  0x20   :  { %606 = shalt.err (!%p603_p1)
}
  0x21   :  { %27 = dma.hbm_to_vmem [thread:$0]  %s778_s1, 1024, %s680_s27, [#allocation3], %s635_s13, %s635_s13, %s636_s14  }
  0x22   :  { %s637_s26 = smov [#allocation6]   ;;  %s607_s8 = scalar_lea.hbm %s782_s5, 1024 }
  0x23   :  { %s49_s28 = sshll.u32 %s637_s26, 4  ;;  %p608_p2 = scmp.ne.s32.totalorder %s782_s5, %s607_s8  ;;  %s50_s28 = int_to_ptr.vmem [resolvable:$true] %s49_s28 }
  0x24   :  { %p611_p3 = scmp.lt.u32.totalorder %s607_s8, %s782_s5 }
  0x26   :  { %p613_p4 = pnand %p611_p3, %p608_p2 }
  0x28   :  { %616 = shalt.err (!%p613_p4)
}
  0x29   :  { %s617_s15 = scalar_lea.vmem %s50_s28, 1024  ;;  %p622_p6 = scmp.lt.s32.totalorder %s50_s28, %s50_s28 }
  0x2a   :  { %p618_p5 = scmp.ne.s32.totalorder %s50_s28, %s617_s15  ;;  %p623_p7 = scmp.lt.s32.totalorder %s617_s15, %s617_s15 }
  0x2c   :  { %p624_p8 = por %p623_p7, %p622_p6 }
  0x2e   :  { %p625_p9 = pnand %p624_p8, %p618_p5 }
  0x30   :  { %628 = shalt.err (!%p625_p9)
}
  0x31   :  { %55 = dma.hbm_to_vmem [thread:$0]  %s782_s5, 1024, %s50_s28, [#allocation5], %s635_s13, %s635_s13, %s636_s14  }
  0x32   :  { %629 = dma.done.wait [#allocation3], 1024  }
  0x33   :  { %630 = vsyncadd [#allocation3], 4294966272 }
  0x34   :  { %631 = dma.done.wait [#allocation5], 2048  }
  0x35   :  { %632 = vsyncadd [#allocation5], 4294965248  ;;  %v638_v0 = vmov 0.0   ;;  %vm639_vm0 = vmmov 0   ;;  %v539_v1 = vld [vmem:[#allocation2] sm:$0xff]   ;;  %v540_v2 = vld [vmem:[#allocation2 + $0x8] sm:$0xff]  }
  0x36   :  { %472 = vmatprep.subr.bf16.mxu0 %v638_v0  ;;  %488 = vmatprep.mubr.msk.bf16.mxu0 %vm639_vm0, %v638_v0  ;;  %v541_v3 = vld [vmem:[#allocation2 + $0x10] sm:$0xff]   ;;  %v547_v4 = vld [vmem:[#allocation4] sm:$0xff]   ;;  %v542_v5 = vld [vmem:[#allocation2 + $0x18] sm:$0xff]  }
  0x37   :  { %492 = vmatprep.subr.bf16.mxu1 %v638_v0  ;;  %508 = vmatprep.mubr.msk.bf16.mxu1 %vm639_vm0, %v638_v0  ;;  %v548_v6 = vld [vmem:[#allocation4 + $0x8] sm:$0xff]   ;;  %v543_v7 = vld [vmem:[#allocation2 + $0x20] sm:$0xff]   ;;  %v549_v8 = vld [vmem:[#allocation4 + $0x10] sm:$0xff]  }
  0x38   :  { %473 = vmatpush3.bf16.msra.mxu0 %v539_v1  ;;  %493 = vmatpush3.bf16.msra.mxu1 %v547_v4  ;;  %v544_v9 = vld [vmem:[#allocation2 + $0x28] sm:$0xff]   ;;  %v550_v10 = vld [vmem:[#allocation4 + $0x18] sm:$0xff]   ;;  %v545_v11 = vld [vmem:[#allocation2 + $0x30] sm:$0xff]  }
  0x39   :  { %474 = vmatprep.subr.bf16.mxu0 %v638_v0  ;;  %494 = vmatprep.subr.bf16.mxu1 %v638_v0  ;;  %v551_v12 = vld [vmem:[#allocation4 + $0x20] sm:$0xff]   ;;  %v546_v13 = vld [vmem:[#allocation2 + $0x38] sm:$0xff]   ;;  %v552_v14 = vld [vmem:[#allocation4 + $0x28] sm:$0xff]  }
  0x3a   :  { %v68_v15 = vld [vmem:[%s777_s0] sm:$0xf]  ;;  %v553_v16 = vld [vmem:[#allocation4 + $0x30] sm:$0xff]   ;;  %v554_v17 = vld [vmem:[#allocation4 + $0x38] sm:$0xff]  }
  0x3b   :  { %v555_v18 = vld [vmem:[#allocation6] sm:$0xff]   ;;  %v556_v19 = vld [vmem:[#allocation6 + $0x8] sm:$0xff]   ;;  %v557_v20 = vld [vmem:[#allocation6 + $0x10] sm:$0xff]  }
  0x3c   :  { %475 = vmatpush3.bf16.msra.mxu0 %v540_v2  ;;  %495 = vmatpush3.bf16.msra.mxu1 %v548_v6  ;;  %v558_v21 = vld [vmem:[#allocation6 + $0x18] sm:$0xff]   ;;  %v559_v22 = vld [vmem:[#allocation6 + $0x20] sm:$0xff]   ;;  %v560_v23 = vld [vmem:[#allocation6 + $0x28] sm:$0xff]  }
  0x3d   :  { %476 = vmatprep.subr.bf16.mxu0 %v638_v0  ;;  %496 = vmatprep.subr.bf16.mxu1 %v638_v0  ;;  %v418_v24 = vld [vmem:[%s779_s2] ss:$0 sm:$0xff]  ;;  %v561_v33 = vld [vmem:[#allocation6 + $0x30] sm:$0xff]   ;;  %v562_v34 = vld [vmem:[#allocation6 + $0x38] sm:$0xff]  }
  0x3e   :  { %v427_v35 = vld [vmem:[%s781_s4] ss:$0 sm:$0xff] }
  0x3f   :  { %v436_v44 = vld [vmem:[%s783_s6] ss:$0 sm:$0xff] }
  0x40   :  { %477 = vmatpush3.bf16.msra.mxu0 %v541_v3  ;;  %497 = vmatpush3.bf16.msra.mxu1 %v549_v8 }
  0x41   :  { %478 = vmatprep.subr.bf16.mxu0 %v638_v0  ;;  %498 = vmatprep.subr.bf16.mxu1 %v638_v0 }
  0x44   :  { %479 = vmatpush3.bf16.msra.mxu0 %v542_v5  ;;  %499 = vmatpush3.bf16.msra.mxu1 %v550_v10 }
  0x45   :  { %480 = vmatprep.subr.bf16.mxu0 %v638_v0  ;;  %500 = vmatprep.subr.bf16.mxu1 %v638_v0 }
  0x48   :  { %481 = vmatpush3.bf16.msra.mxu0 %v543_v7  ;;  %501 = vmatpush3.bf16.msra.mxu1 %v551_v12 }
  0x49   :  { %482 = vmatprep.subr.bf16.mxu0 %v638_v0  ;;  %502 = vmatprep.subr.bf16.mxu1 %v638_v0 }
  0x4c   :  { %483 = vmatpush3.bf16.msra.mxu0 %v544_v9  ;;  %503 = vmatpush3.bf16.msra.mxu1 %v552_v14 }
  0x4d   :  { %484 = vmatprep.subr.bf16.mxu0 %v638_v0  ;;  %504 = vmatprep.subr.bf16.mxu1 %v638_v0 }
  0x50   :  { %485 = vmatpush3.bf16.msra.mxu0 %v545_v11  ;;  %505 = vmatpush3.bf16.msra.mxu1 %v553_v16 }
  0x51   :  { %486 = vmatprep.subr.bf16.mxu0 %v638_v0  ;;  %506 = vmatprep.subr.bf16.mxu1 %v638_v0 }
  0x54   :  { %487 = vmatpush3.bf16.msra.mxu0 %v546_v13  ;;  %507 = vmatpush3.bf16.msra.mxu1 %v554_v17 }
  0x55   :  { %512 = vmatprep.subr.bf16.mxu0 %v638_v0 }
  0x57   :  { %489 = vmatmul.mubr.bf16.vlgmr.msra.gmra.mrb[0].mxu0 %v68_v15 }
  0x58   :  { %528 = vmatprep.mubr.msk.bf16.mxu0 %vm639_vm0, %v638_v0  ;;  %513 = vmatpush3.bf16.msra.mxu0 %v555_v18 }
  0x59   :  { %514 = vmatprep.subr.bf16.mxu0 %v638_v0 }
  0x5c   :  { %515 = vmatpush3.bf16.msra.mxu0 %v556_v19 }
  0x5d   :  { %516 = vmatprep.subr.bf16.mxu0 %v638_v0 }
  0x60   :  { %517 = vmatpush3.bf16.msra.mxu0 %v557_v20 }
  0x61   :  { %518 = vmatprep.subr.bf16.mxu0 %v638_v0 }
  0x64   :  { %519 = vmatpush3.bf16.msra.mxu0 %v558_v21 }
  0x65   :  { %520 = vmatprep.subr.bf16.mxu0 %v638_v0 }
  0x68   :  { %521 = vmatpush3.bf16.msra.mxu0 %v559_v22 }
  0x69   :  { %522 = vmatprep.subr.bf16.mxu0 %v638_v0 }
  0x6c   :  { %523 = vmatpush3.bf16.msra.mxu0 %v560_v23 }
  0x6d   :  { %524 = vmatprep.subr.bf16.mxu0 %v638_v0 }
  0x70   :  { %525 = vmatpush3.bf16.msra.mxu0 %v561_v33 }
  0x71   :  { %526 = vmatprep.subr.bf16.mxu0 %v638_v0 }
  0x74   :  { %527 = vmatpush3.bf16.msra.mxu0 %v562_v34 }
 0x12a   :  { %v174_v25 = vpop.f32.mrb[0].mxu0 }
 0x12b   :  { %v175_v26 = vadd.f32 %v418_v24, %v174_v25  ;;  %v490_v27 = vpop.f32.mrb[1].mxu0 }
 0x12c   :  { %v177_v28 = vpop.f32.mrb[2].mxu0 }
 0x12d   :  { %vm180_vm1 = vcmp.ge.f32.partialorder %v175_v26, 0.0  ;;  %v181_v29 = vmul.f32 0.02, %v175_v26  ;;  %v491_v30 = vpop.f32.mrb[3].mxu0 }
 0x12f   :  { %v182_v31 = vsel %vm180_vm1, %v175_v26, %v181_v29 }
 0x130   :  { %v183_v32 = vpack.c.bf16 %v182_v31, %v182_v31 }
 0x132   :  { %509 = vmatmul.mubr.bf16.vlgmr.msra.gmra.mrb[0].mxu1 %v183_v32 }
 0x205   :  { %v289_v36 = vpop.f32.mrb[0].mxu1 }
 0x206   :  { %v290_v37 = vadd.f32 %v427_v35, %v289_v36  ;;  %v510_v38 = vpop.f32.mrb[1].mxu1 }
 0x207   :  { %v292_v39 = vpop.f32.mrb[2].mxu1 }
 0x208   :  { %vm295_vm2 = vcmp.ge.f32.partialorder %v290_v37, 0.0  ;;  %v296_v40 = vmul.f32 0.02, %v290_v37  ;;  %v511_v41 = vpop.f32.mrb[3].mxu1 }
 0x20a   :  { %v297_v42 = vsel %vm295_vm2, %v290_v37, %v296_v40 }
 0x20b   :  { %v298_v43 = vpack.c.bf16 %v297_v42, %v297_v42 }
 0x20d   :  { %529 = vmatmul.mubr.bf16.vlgmr.msra.gmra.mrb[4].mxu0 %v298_v43 }
 0x2e0   :  { %v404_v45 = vpop.f32.mrb[4].mxu0 }
 0x2e1   :  { %v405_v46 = vadd.f32 %v436_v44, %v404_v45  ;;  %v530_v47 = vpop.f32.mrb[5].mxu0 }
 0x2e2   :  { %v407_v48 = vpop.f32.mrb[6].mxu0 }
 0x2e3   :  { %v410_v49 = vpack.c.bf16 %v405_v46, %v405_v46  ;;  %v531_v50 = vpop.f32.mrb[7].mxu0 }
 0x2e5   :  { %411 = vst [vmem:[%s784_s7] sm:$0xf] %v410_v49 }
 0x2e6   :  { %416 = vsyncpa [#allocation3], 1 }
 0x2e7   :  { %417 = vsyncpa [#allocation5], 1 }

</bundles_post_ra>
